<compile_context>
chip_gen: v5e
topology: v5e:2x2
jax: 0.10.0
libtpu: 0.0.40
codegen_flags: <defaults>
</compile_context>

<pallas_src>
import jax
import jax.numpy as jnp
from jax.experimental import pallas as pl
from jax.experimental.pallas import tpu as pltpu

_LANE_WIDTHS = (4096, 2048, 1024, 512, 256, 128)  # candidate lane-dense widths
_TARGET_BLOCK_BYTES = 8 << 20                      # ~8 MiB per block buffer
_VMEM_LIMIT_BYTES = 48 << 20                       # 2 bufs x (in+out) x 8 MiB = 32 MiB used
_SINGLE_BLOCK_MAX_ROWS = 128                       # above this, force >= 2 blocks (v7x 2 TCs)


def _affine_kernel(x_ref, o_ref):
    # ((x + 2) * 3 - 1) / 4  ==  0.75 * x + 1.25
    x = x_ref[...].astype(jnp.float32)
    o_ref[...] = (x * 0.75 + 1.25).astype(o_ref.dtype)


def _pick_lane_width(n):
    for w in _LANE_WIDTHS:
        if n % w == 0:
            return w
    return None


def _pick_tile_rows(rows, lane_w, itemsize):
    """Rows per block: big enough to amortize per-step overhead, small enough
    for VMEM, and >= 2 blocks on mid-size inputs so both v7x cores work."""
    if rows <= _SINGLE_BLOCK_MAX_ROWS:
        return rows  # single full-extent block (exempt from (8,128) divisibility)
    gran = max(8, 32 // itemsize)  # sublane granularity (8 for f32, 16 for bf16)
    max_rows = max(gran, (_TARGET_BLOCK_BYTES // (lane_w * itemsize)) // gran * gran)
    half = -(-((rows + 1) // 2) // gran) * gran      # ~rows/2, rounded up to gran
    half = max(_SINGLE_BLOCK_MAX_ROWS, half)
    return min(max_rows, half)


def pt_module_forward(x, *, donate_input=False):
    """y = ((x + 2) * 3 - 1) / 4, elementwise, via a Pallas TPU kernel."""
    orig_shape = x.shape
    n = x.size
    itemsize = jnp.dtype(x.dtype).itemsize

    # ---- layout plumbing: lane-dense (rows, lane_w) slab, pad-free if possible
    lane_w = _pick_lane_width(n)
    needs_pad = lane_w is None
    if needs_pad:
        # Fallback (n not a multiple of 128): pad flat by < 1024 elements.
        lane_w = 1024
        rows = pl.cdiv(n, lane_w)
        flat = jnp.pad(x.reshape(-1), (0, rows * lane_w - n))
    else:
        rows = n // lane_w
        flat = x.reshape(-1)          # free view: contiguous reshape, no HBM copy
    x2d = flat.reshape(rows, lane_w)

    tile_rows = _pick_tile_rows(rows, lane_w, itemsize)
    grid = (pl.cdiv(rows, tile_rows),)  # last block may be partial (masked writes)

    kwargs = {}
    if donate_input and not needs_pad:
        # Reuse the input HBM buffer for the output (only valid when the
        # caller truly donates x and never reads it afterwards).
        kwargs["input_output_aliases"] = {0: 0}

    out2d = pl.pallas_call(
        _affine_kernel,
        out_shape=jax.ShapeDtypeStruct((rows, lane_w), x.dtype),
        grid=grid,
        in_specs=[pl.BlockSpec((tile_rows, lane_w), lambda i: (i, 0))],
        out_specs=pl.BlockSpec((tile_rows, lane_w), lambda i: (i, 0)),
        compiler_params=pltpu.CompilerParams(
            dimension_semantics=("parallel",),
            vmem_limit_bytes=_VMEM_LIMIT_BYTES,
        ),
        **kwargs,
    )(x2d)

    out = out2d.reshape(-1)
    if needs_pad:
        out = out[:n]
    return out.reshape(orig_shape)


if __name__ == "__main__":
    key = jax.random.PRNGKey(0)
    x = jax.random.normal(key, (2, 4, 16, 16), dtype=jnp.float32)

    # Reference (literal PyTorch op chain), computed before the kernel call.
    ref = ((x + 2.0) * 3.0 - 1.0) / 4.0

    out = jax.block_until_ready(pt_module_forward(x))

    assert out.shape == x.shape and out.dtype == x.dtype
    assert jnp.allclose(out, ref, atol=1e-6, rtol=1e-6)

    print("KERNEL_OK")
</pallas_src>

<mosaic_0001>
module attributes {stable_mosaic.version = 11 : i64} {
  func.func @_affine_kernel(%arg0: i32, %arg1: memref<1x2048xf32, #tpu.memory_space<vmem>>, %arg2: memref<1x2048xf32, #tpu.memory_space<vmem>>) attributes {dimension_semantics = [#tpu.dimension_semantics<parallel>], iteration_bounds = array<i64: 1>, scalar_prefetch = 0 : i64, scratch_operands = 0 : i64, tpu.core_type = #tpu.core_type<tc>, window_params = [{transform_indices = @transform_0, window_bounds = array<i64: 1, 2048>}, {transform_indices = @transform_1, window_bounds = array<i64: 1, 2048>}]} {
    %c0 = arith.constant 0 : index
    %c0_0 = arith.constant 0 : index
    %0 = vector.load %arg1[%c0, %c0_0] : memref<1x2048xf32, #tpu.memory_space<vmem>>, vector<1x2048xf32>
    %cst = arith.constant 7.500000e-01 : f32
    %1 = vector.broadcast %cst : f32 to vector<1x2048xf32>
    %2 = arith.mulf %0, %1 : vector<1x2048xf32>
    %cst_1 = arith.constant 1.250000e+00 : f32
    %3 = vector.broadcast %cst_1 : f32 to vector<1x2048xf32>
    %4 = arith.addf %2, %3 : vector<1x2048xf32>
    %c0_2 = arith.constant 0 : index
    %c0_3 = arith.constant 0 : index
    %5 = vector.load %arg2[%c0_2, %c0_3] : memref<1x2048xf32, #tpu.memory_space<vmem>>, vector<1x2048xf32>
    tpu.vector_store %arg2[%c0_2, %c0_3], %4 {strides = array<i32>} : memref<1x2048xf32, #tpu.memory_space<vmem>>, vector<1x2048xf32>,
    return
  }
  func.func @transform_0(%arg0: i32) -> (i32, i32) {
    %c0_i32 = arith.constant 0 : i32
    %c0_i32_0 = arith.constant 0 : i32
    return %arg0, %c0_i32 : i32, i32
  }
  func.func @transform_1(%arg0: i32) -> (i32, i32) {
    %c0_i32 = arith.constant 0 : i32
    %c0_i32_0 = arith.constant 0 : i32
    return %arg0, %c0_i32 : i32, i32
  }
}

</mosaic_0001>

<bundles_post_ra>
// kernel: tpu_custom_call.1
= control target key start
LH: loop header
LB: loop body
LE: loop exit
PB: predicated region body
PF: predicated region fallthrough
CT: control target
= control target key end

     0   :  { %6 = vsyncpa [#allocation3], 0  ;;  %s120_s0 = inlined_call_operand.hbm [shape: f32[1,2048], index: 0, kind: input, shape index: {}]   ;;  %s121_s1 = inlined_call_operand.hbm [shape: f32[1,2048], index: 1, kind: output, shape index: {}]  }
   0x1   :  { %7 = vsyncpa [#allocation4], 0  ;;  %s13_s8 = sshll.u32 %s120_s0, 4  ;;  %s102_s9 = smov [#allocation2]   ;;  %s14_s8 = int_to_ptr.hbm [resolvable:$true] %s13_s8 }
   0x2   :  { %s15_s10 = sshll.u32 %s102_s9, 4  ;;  %s16_s10 = int_to_ptr.vmem [resolvable:$true] %s15_s10 }
   0x3   :  { %18 = dma.hbm_to_vmem [thread:$0]  %s14_s8, 256, %s16_s10, [#allocation3]  }
   0x4   :  { %98 = dma.done.wait [#allocation3], 256  }
   0x5   :  { %99 = vsyncadd [#allocation3], 4294967040  ;;  %v23_v0 = vld [vmem:[#allocation2] sm:$0xff]  ;;  %v24_v1 = vld [vmem:[#allocation2 + $0x8] sm:$0xff]  ;;  %s103_s11 = smov [#allocation5]   ;;  %s38_s15 = sshll.u32 %s121_s1, 4  ;;  %s39_s15 = int_to_ptr.hbm [resolvable:$true] %s38_s15 }
   0x6   :  { %v25_v2 = vmul.f32 0.75, %v23_v0  ;;  %v26_v3 = vmul.f32 0.75, %v24_v1  ;;  %s36_s12 = sshll.u32 %s103_s11, 4  ;;  %s37_s12 = int_to_ptr.vmem [resolvable:$true] %s36_s12 }
   0x8   :  { %v27_v4 = vadd.f32 1.25, %v25_v2  ;;  %v28_v5 = vadd.f32 1.25, %v26_v3 }
   0xa   :  { %29 = vst [vmem:[#allocation5] sm:$0xff] %v27_v4 }
   0xb   :  { %30 = vst [vmem:[#allocation5 + $0x8] sm:$0xff] %v28_v5 }
   0xc   :  { %41 = dma.vmem_to_hbm [thread:$0]  %s37_s12, 256, %s39_s15, [#allocation4]  }
   0xd   :  { %100 = dma.done.wait [#allocation4], 256  }
   0xe   :  { %101 = vsyncadd [#allocation4], 4294967040 }
   0xf   :  { %46 = vsyncpa [#allocation3], 1 }
  0x10   :  { %47 = vsyncpa [#allocation4], 1 }

</bundles_post_ra>
